<compile_context>
chip_gen: v7x
topology: tpu7x:2x2x1
jax: 0.10.0
libtpu: 0.0.40
codegen_flags: <defaults>
</compile_context>

<pallas_src>
import functools
import math

import numpy as np
import jax
import jax.numpy as jnp
from jax import lax
from jax.experimental import pallas as pl
from jax.experimental.pallas import tpu as pltpu


def relative_position_mat_create(max_length):
    """Faithful port of the PyTorch helper: mat[i, j] = |i - j|."""
    relative_position_mat = np.zeros((max_length, max_length), dtype=np.float32)
    for i in range(1, max_length):
        index = np.arange(max_length - i)
        relative_position_mat[index, index + i] = i
        relative_position_mat[index + i, index] = i
    return relative_position_mat


def _pick_tile_q(lq, preferred):
    if lq <= preferred:
        return lq
    start = preferred - (preferred % 8)
    for t in range(start, 7, -8):          # sublane-aligned divisor of Lq
        if lq % t == 0:
            return t
    return lq


def _pick_tile_k(lk, preferred):
    if lk <= preferred:
        return lk
    start = preferred - (preferred % 128)
    for t in range(start, 127, -128):      # lane-aligned divisor of Lk (mask block constraint)
        if lk % t == 0:
            return t
    return lk


def _local_dot_attention_kernel(*refs, has_mask, scale_inv, loc_coef, neg_fill):
    if has_mask:
        q_ref, k_ref, v_ref, mask_ref, o_ref, m_sc, l_sc, acc_sc = refs
    else:
        q_ref, k_ref, v_ref, o_ref, m_sc, l_sc, acc_sc = refs
        mask_ref = None

    ki = pl.program_id(3)

    @pl.when(ki == 0)
    def _():
        m_sc[...] = jnp.full(m_sc.shape, -jnp.inf, m_sc.dtype)
        l_sc[...] = jnp.zeros(l_sc.shape, l_sc.dtype)
        acc_sc[...] = jnp.zeros(acc_sc.shape, acc_sc.dtype)

    # Fold 1/sqrt(key_size) into the small [tq, Dk] operand (cheaper than scaling [tq, tk]).
    q = q_ref[0, 0] * jnp.asarray(scale_inv, dtype=q_ref.dtype)    # [tq, Dk]
    k = k_ref[0, 0]                                                # [tk, Dk]
    v = v_ref[0, 0]                                                # [tk, Dv]

    # S = Q @ K^T without an in-kernel transpose: contract the last dims on the MXU.
    s = lax.dot_general(q, k, dimension_numbers=(((1,), (1,)), ((), ())),
                        preferred_element_type=jnp.float32)        # [tq, tk] f32

    if has_mask:
        msk = mask_ref[0, 0]                                       # [1 or tq, tk]
        s = jnp.where(msk != 0, jnp.float32(neg_fill), s)

    tq, tk = s.shape

    # Online softmax (flash-style) across the Lk grid axis; softmax math stays in f32.
    m_prev = m_sc[...]                                             # [tq, 1]
    m_new = jnp.maximum(m_prev, jnp.max(s, axis=-1, keepdims=True))
    alpha = jnp.exp(m_prev - m_new)
    e = jnp.exp(s - m_new)                                         # [tq, tk]
    l_sc[...] = alpha * l_sc[...] + jnp.sum(e, axis=-1, keepdims=True)

    # Locality weights exp(-(i-j)^2 * 2/Lk^2) generated in-kernel from global row/col indices
    # (replaces the materialized relative_position matrix of the PyTorch module).
    rows = lax.broadcasted_iota(jnp.int32, (tq, tk), 0) + pl.program_id(2) * tq
    cols = lax.broadcasted_iota(jnp.int32, (tq, tk), 1) + ki * tk
    d = (rows - cols).astype(jnp.float32)
    w = e * jnp.exp(-(d * d) * jnp.float32(loc_coef))

    acc_sc[...] = alpha * acc_sc[...] + jnp.dot(
        w.astype(v.dtype), v, preferred_element_type=jnp.float32)  # [tq, Dv] f32 accumulate
    m_sc[...] = m_new

    @pl.when(ki == pl.num_programs(3) - 1)
    def _():
        # Apply the softmax denominator once to the [tq, Dv] accumulator.
        o_ref[0, 0] = (acc_sc[...] * pl.reciprocal(l_sc[...], approx=False)).astype(o_ref.dtype)


def local_dot_attention(Q, K, V, mask_out=None, *, block_q=256, block_k=512):
    """Pallas implementation of LocalDotAttention.forward (dropout == 0)."""
    B, H, Lq, Dk = Q.shape
    Bk, Hk, Lk, Dk2 = K.shape
    Dv = V.shape[-1]
    assert (Bk, Hk, Dk2) == (B, H, Dk), "Q/K shape mismatch"
    assert V.shape[:3] == (B, H, Lk), "K/V shape mismatch"

    tq = _pick_tile_q(Lq, block_q)
    tk = _pick_tile_k(Lk, block_k)
    nq = Lq // tq
    nk = Lk // tk

    scale_inv = 1.0 / math.sqrt(Dk)          # self.scale = sqrt(key_size)
    loc_coef = 2.0 / float(Lk * Lk)          # 1 / (Lk**2 / 2)

    in_specs = [
        pl.BlockSpec((1, 1, tq, Dk), lambda b, h, qi, ki: (b, h, qi, 0)),   # Q tile
        pl.BlockSpec((1, 1, tk, Dk), lambda b, h, qi, ki: (b, h, ki, 0)),   # K tile
        pl.BlockSpec((1, 1, tk, Dv), lambda b, h, qi, ki: (b, h, ki, 0)),   # V tile
    ]
    args = [Q, K, V]

    has_mask = mask_out is not None
    if has_mask:
        m = jnp.asarray(mask_out)
        while m.ndim < 4:
            m = m[None]
        MB, MH, MQ, MLk = m.shape
        assert MLk == Lk and MB in (1, B) and MH in (1, H) and MQ in (1, Lq), \
            "mask_out must broadcast to [B, H, 1 or Lq, Lk]"
        # Keep the mask at its natural (un-expanded) shape; broadcast inside the kernel.
        m = m.astype(jnp.int32)
        mq_blk = 1 if MQ == 1 else tq

        def mask_map(b, h, qi, ki, _mb=MB, _mh=MH, _mq=MQ):
            return (b if _mb != 1 else 0,
                    h if _mh != 1 else 0,
                    qi if _mq != 1 else 0,
                    ki)

        in_specs.append(pl.BlockSpec((1, 1, mq_blk, tk), mask_map))
        args.append(m)

    kernel = functools.partial(
        _local_dot_attention_kernel,
        has_mask=has_mask,
        scale_inv=scale_inv,
        loc_coef=loc_coef,
        neg_fill=-1000000000.0,   # matches output.masked_fill_(mask_out, -1000000000.0)
    )

    return pl.pallas_call(
        kernel,
        out_shape=jax.ShapeDtypeStruct((B, H, Lq, Dv), Q.dtype),
        grid_spec=pltpu.PrefetchScalarGridSpec(
            num_scalar_prefetch=0,
            grid=(B, H, nq, nk),
            in_specs=in_specs,
            out_specs=pl.BlockSpec((1, 1, tq, Dv), lambda b, h, qi, ki: (b, h, qi, 0)),
            scratch_shapes=[
                pltpu.VMEM((tq, 1), jnp.float32),    # running max
                pltpu.VMEM((tq, 1), jnp.float32),    # running softmax denominator
                pltpu.VMEM((tq, Dv), jnp.float32),   # output accumulator
            ],
        ),
        compiler_params=pltpu.CompilerParams(
            dimension_semantics=("parallel", "parallel", "parallel", "arbitrary"),
            vmem_limit_bytes=64 * 1024 * 1024,
        ),
    )(*args)


def _reference(Q, K, V, mask_out=None):
    """Pure-JAX reference matching the PyTorch forward (dropout=0)."""
    B, H, Lq, Dk = Q.shape
    Lk = K.shape[2]
    scores = jnp.einsum("bhqd,bhkd->bhqk", Q, K) / math.sqrt(Dk)
    if mask_out is not None:
        scores = jnp.where(jnp.asarray(mask_out, dtype=bool), jnp.float32(-1000000000.0), scores)
    p = jax.nn.softmax(scores, axis=-1)
    rel = jnp.asarray(relative_position_mat_create(Lq))            # [Lq, Lq]  (module needs Lq == Lk)
    loc = jnp.exp(-(rel ** 2) / (Lk ** 2 / 2))
    p = p * loc[None, None]
    return jnp.einsum("bhqk,bhkd->bhqd", p, V)


if __name__ == "__main__":
    # Small deterministic example: batch=2, heads=2, seq=8, key_size=16, value_size=32.
    B, H, L = 2, 2, 8
    key_size, value_size = 16, 32

    key = jax.random.PRNGKey(0)
    kq, kk, kv, km = jax.random.split(key, 4)

    Q = jax.random.normal(kq, (B, H, L, key_size), dtype=jnp.float32)
    K = jax.random.normal(kk, (B, H, L, key_size), dtype=jnp.float32)
    V = jax.random.normal(kv, (B, H, L, value_size), dtype=jnp.float32)

    # Padding-style mask "[..., 1, seq_len]": True where masked.
    mask_out = jax.random.bernoulli(km, p=0.2, shape=(B, 1, 1, L))

    # f32 path, masked.
    out = jax.block_until_ready(local_dot_attention(Q, K, V, mask_out=mask_out))
    ref = _reference(Q, K, V, mask_out=mask_out)
    assert out.shape == (B, H, L, value_size)
    assert jnp.allclose(out, ref, atol=2e-5, rtol=2e-5), "masked f32 mismatch vs reference"

    # f32 path, no mask (mask-free specialized kernel variant).
    out_nm = jax.block_until_ready(local_dot_attention(Q, K, V))
    ref_nm = _reference(Q, K, V)
    assert jnp.allclose(out_nm, ref_nm, atol=2e-5, rtol=2e-5), "unmasked f32 mismatch vs reference"

    # bf16 operands for the MXU (f32 accumulation / f32 softmax inside the kernel).
    Qb, Kb, Vb = (x.astype(jnp.bfloat16) for x in (Q, K, V))
    out_bf = jax.block_until_ready(local_dot_attention(Qb, Kb, Vb, mask_out=mask_out))
    ref_bf = _reference(Qb.astype(jnp.float32), Kb.astype(jnp.float32), Vb.astype(jnp.float32),
                        mask_out=mask_out)
    assert jnp.allclose(out_bf.astype(jnp.float32), ref_bf, atol=1e-1, rtol=1e-1), \
        "bf16 mismatch vs reference"

    print("KERNEL_OK")
</pallas_src>

<mosaic_0001>
module attributes {stable_mosaic.version = 11 : i64} {
  func.func @_local_dot_attention_kernel(%arg0: i32, %arg1: i32, %arg2: i32, %arg3: i32, %arg4: memref<1x1x8x16xf32, #tpu.memory_space<vmem>>, %arg5: memref<1x1x8x16xf32, #tpu.memory_space<vmem>>, %arg6: memref<1x1x8x32xf32, #tpu.memory_space<vmem>>, %arg7: memref<1x1x1x8xi32, #tpu.memory_space<vmem>>, %arg8: memref<1x1x8x32xf32, #tpu.memory_space<vmem>>, %arg9: memref<8x1xf32, #tpu.memory_space<vmem>>, %arg10: memref<8x1xf32, #tpu.memory_space<vmem>>, %arg11: memref<8x32xf32, #tpu.memory_space<vmem>>) attributes {dimension_semantics = [#tpu.dimension_semantics<parallel>, #tpu.dimension_semantics<parallel>, #tpu.dimension_semantics<parallel>, #tpu.dimension_semantics<arbitrary>], iteration_bounds = array<i64: 2, 2, 1, 1>, scalar_prefetch = 0 : i64, scratch_operands = 3 : i64, tpu.core_type = #tpu.core_type<tc>, window_params = [{transform_indices = @transform_0, window_bounds = array<i64: 1, 1, 8, 16>}, {transform_indices = @transform_1, window_bounds = array<i64: 1, 1, 8, 16>}, {transform_indices = @transform_2, window_bounds = array<i64: 1, 1, 8, 32>}, {transform_indices = @transform_3, window_bounds = array<i64: 1, 1, 1, 8>}, {transform_indices = @transform_4, window_bounds = array<i64: 1, 1, 8, 32>}]} {
    %c0_i32 = arith.constant 0 : i32
    %0 = arith.cmpi eq, %arg3, %c0_i32 : i32
    %1 = arith.extui %0 : i1 to i32
    %c0_i32_0 = arith.constant 0 : i32
    %2 = arith.cmpi ne, %1, %c0_i32_0 : i32
    scf.if %2 {
      %cst_39 = arith.constant 0xFF800000 : f32
      %62 = vector.broadcast %cst_39 : f32 to vector<8x1xf32>
      %c0_40 = arith.constant 0 : index
      %c0_41 = arith.constant 0 : index
      %63 = vector.load %arg9[%c0_40, %c0_41] : memref<8x1xf32, #tpu.memory_space<vmem>>, vector<8x1xf32>
      tpu.vector_store %arg9[%c0_40, %c0_41], %62 {strides = array<i32>} : memref<8x1xf32, #tpu.memory_space<vmem>>, vector<8x1xf32>,
      %cst_42 = arith.constant 0.000000e+00 : f32
      %64 = vector.broadcast %cst_42 : f32 to vector<8x1xf32>
      %c0_43 = arith.constant 0 : index
      %c0_44 = arith.constant 0 : index
      %65 = vector.load %arg10[%c0_43, %c0_44] : memref<8x1xf32, #tpu.memory_space<vmem>>, vector<8x1xf32>
      tpu.vector_store %arg10[%c0_43, %c0_44], %64 {strides = array<i32>} : memref<8x1xf32, #tpu.memory_space<vmem>>, vector<8x1xf32>,
      %cst_45 = arith.constant 0.000000e+00 : f32
      %66 = vector.broadcast %cst_45 : f32 to vector<8x32xf32>
      %c0_46 = arith.constant 0 : index
      %c0_47 = arith.constant 0 : index
      %67 = vector.load %arg11[%c0_46, %c0_47] : memref<8x32xf32, #tpu.memory_space<vmem>>, vector<8x32xf32>
      tpu.vector_store %arg11[%c0_46, %c0_47], %66 {strides = array<i32>} : memref<8x32xf32, #tpu.memory_space<vmem>>, vector<8x32xf32>,
    } else {
    }
    %c0 = arith.constant 0 : index
    %c0_1 = arith.constant 0 : index
    %c0_2 = arith.constant 0 : index
    %c0_3 = arith.constant 0 : index
    %3 = vector.load %arg4[%c0, %c0_1, %c0_2, %c0_3] : memref<1x1x8x16xf32, #tpu.memory_space<vmem>>, vector<1x1x8x16xf32>
    %4 = vector.shape_cast %3 : vector<1x1x8x16xf32> to vector<8x16xf32>
    %cst = arith.constant 2.500000e-01 : f32
    %5 = vector.broadcast %cst : f32 to vector<8x16xf32>
    %6 = arith.mulf %4, %5 : vector<8x16xf32>
    %c0_4 = arith.constant 0 : index
    %c0_5 = arith.constant 0 : index
    %c0_6 = arith.constant 0 : index
    %c0_7 = arith.constant 0 : index
    %7 = vector.load %arg5[%c0_4, %c0_5, %c0_6, %c0_7] : memref<1x1x8x16xf32, #tpu.memory_space<vmem>>, vector<1x1x8x16xf32>
    %8 = vector.shape_cast %7 : vector<1x1x8x16xf32> to vector<8x16xf32>
    %c0_8 = arith.constant 0 : index
    %c0_9 = arith.constant 0 : index
    %c0_10 = arith.constant 0 : index
    %c0_11 = arith.constant 0 : index
    %9 = vector.load %arg6[%c0_8, %c0_9, %c0_10, %c0_11] : memref<1x1x8x32xf32, #tpu.memory_space<vmem>>, vector<1x1x8x32xf32>
    %10 = vector.shape_cast %9 : vector<1x1x8x32xf32> to vector<8x32xf32>
    %cst_12 = arith.constant dense<0.000000e+00> : vector<8x8xf32>
    %11 = tpu.matmul %6, %8, %cst_12 {dimension_numbers = #tpu.dot_dimension_numbers<[1], [1], [0], [0], [0, 0, 1, 0], [], []>} : vector<8x16xf32>, vector<8x16xf32>, vector<8x8xf32> -> vector<8x8xf32>
    %c0_13 = arith.constant 0 : index
    %c0_14 = arith.constant 0 : index
    %c0_15 = arith.constant 0 : index
    %c0_16 = arith.constant 0 : index
    %12 = vector.load %arg7[%c0_13, %c0_14, %c0_15, %c0_16] : memref<1x1x1x8xi32, #tpu.memory_space<vmem>>, vector<1x1x1x8xi32>
    %13 = vector.shape_cast %12 : vector<1x1x1x8xi32> to vector<1x8xi32>
    %c0_i32_17 = arith.constant 0 : i32
    %14 = vector.broadcast %c0_i32_17 : i32 to vector<1x8xi32>
    %15 = arith.cmpi ne, %13, %14 : vector<1x8xi32>
    %cst_18 = arith.constant -1.000000e+09 : f32
    %16 = vector.shape_cast %15 : vector<1x8xi1> to vector<1x8xi1>
    %17 = vector.broadcast %16 : vector<1x8xi1> to vector<8x8xi1>
    %18 = vector.broadcast %cst_18 : f32 to vector<8x8xf32>
    %19 = arith.select %17, %18, %11 : vector<8x8xi1>, vector<8x8xf32>
    %c0_19 = arith.constant 0 : index
    %c0_20 = arith.constant 0 : index
    %20 = vector.load %arg9[%c0_19, %c0_20] : memref<8x1xf32, #tpu.memory_space<vmem>>, vector<8x1xf32>
    %cst_21 = arith.constant dense<0xFF800000> : vector<8xf32>
    %21 = vector.multi_reduction <maximumf>, %19, %cst_21 [1] : vector<8x8xf32> to vector<8xf32>
    %22 = vector.shape_cast %21 : vector<8xf32> to vector<8x1xf32>
    %23 = arith.maximumf %20, %22 : vector<8x1xf32>
    %24 = arith.subf %20, %23 : vector<8x1xf32>
    %25 = math.exp %24 : vector<8x1xf32>
    %26 = vector.broadcast %23 : vector<8x1xf32> to vector<8x8xf32>
    %27 = arith.subf %19, %26 : vector<8x8xf32>
    %28 = math.exp %27 : vector<8x8xf32>
    %c0_22 = arith.constant 0 : index
    %c0_23 = arith.constant 0 : index
    %29 = vector.load %arg10[%c0_22, %c0_23] : memref<8x1xf32, #tpu.memory_space<vmem>>, vector<8x1xf32>
    %30 = arith.mulf %25, %29 : vector<8x1xf32>
    %cst_24 = arith.constant dense<0.000000e+00> : vector<8xf32>
    %31 = vector.multi_reduction <add>, %28, %cst_24 [1] : vector<8x8xf32> to vector<8xf32>
    %32 = vector.shape_cast %31 : vector<8xf32> to vector<8x1xf32>
    %33 = arith.addf %30, %32 : vector<8x1xf32>
    %c0_25 = arith.constant 0 : index
    %c0_26 = arith.constant 0 : index
    %34 = vector.load %arg10[%c0_25, %c0_26] : memref<8x1xf32, #tpu.memory_space<vmem>>, vector<8x1xf32>
    tpu.vector_store %arg10[%c0_25, %c0_26], %33 {strides = array<i32>} : memref<8x1xf32, #tpu.memory_space<vmem>>, vector<8x1xf32>,
    %35 = tpu.iota {dimensions = array<i32: 0>} : vector<8x8xi32>
    %c8_i32 = arith.constant 8 : i32
    %36 = arith.muli %arg2, %c8_i32 : i32
    %37 = vector.broadcast %36 : i32 to vector<8x8xi32>
    %38 = arith.addi %35, %37 : vector<8x8xi32>
    %39 = tpu.iota {dimensions = array<i32: 1>} : vector<8x8xi32>
    %c8_i32_27 = arith.constant 8 : i32
    %40 = arith.muli %arg3, %c8_i32_27 : i32
    %41 = vector.broadcast %40 : i32 to vector<8x8xi32>
    %42 = arith.addi %39, %41 : vector<8x8xi32>
    %43 = arith.subi %38, %42 : vector<8x8xi32>
    %44 = arith.sitofp %43 : vector<8x8xi32> to vector<8x8xf32>
    %45 = arith.mulf %44, %44 : vector<8x8xf32>
    %cst_28 = arith.constant 0.000000e+00 : f32
    %46 = vector.broadcast %cst_28 : f32 to vector<8x8xf32>
    %47 = arith.subf %46, %45 : vector<8x8xf32>
    %cst_29 = arith.constant 3.125000e-02 : f32
    %48 = vector.broadcast %cst_29 : f32 to vector<8x8xf32>
    %49 = arith.mulf %47, %48 : vector<8x8xf32>
    %50 = math.exp %49 : vector<8x8xf32>
    %51 = arith.mulf %28, %50 : vector<8x8xf32>
    %c0_30 = arith.constant 0 : index
    %c0_31 = arith.constant 0 : index
    %52 = vector.load %arg11[%c0_30, %c0_31] : memref<8x32xf32, #tpu.memory_space<vmem>>, vector<8x32xf32>
    %53 = vector.broadcast %25 : vector<8x1xf32> to vector<8x32xf32>
    %54 = arith.mulf %53, %52 : vector<8x32xf32>
    %cst_32 = arith.constant dense<0.000000e+00> : vector<8x32xf32>
    %55 = tpu.matmul %51, %10, %cst_32 {dimension_numbers = #tpu.dot_dimension_numbers<[1], [0], [0], [1], [0, 0, 1, 1], [], []>} : vector<8x8xf32>, vector<8x32xf32>, vector<8x32xf32> -> vector<8x32xf32>
    %56 = arith.addf %54, %55 : vector<8x32xf32>
    %c0_33 = arith.constant 0 : index
    %c0_34 = arith.constant 0 : index
    %57 = vector.load %arg11[%c0_33, %c0_34] : memref<8x32xf32, #tpu.memory_space<vmem>>, vector<8x32xf32>
    tpu.vector_store %arg11[%c0_33, %c0_34], %56 {strides = array<i32>} : memref<8x32xf32, #tpu.memory_space<vmem>>, vector<8x32xf32>,
    %c0_35 = arith.constant 0 : index
    %c0_36 = arith.constant 0 : index
    %58 = vector.load %arg9[%c0_35, %c0_36] : memref<8x1xf32, #tpu.memory_space<vmem>>, vector<8x1xf32>
    tpu.vector_store %arg9[%c0_35, %c0_36], %23 {strides = array<i32>} : memref<8x1xf32, #tpu.memory_space<vmem>>, vector<8x1xf32>,
    %c0_i32_37 = arith.constant 0 : i32
    %59 = arith.cmpi eq, %arg3, %c0_i32_37 : i32
    %60 = arith.extui %59 : i1 to i32
    %c0_i32_38 = arith.constant 0 : i32
    %61 = arith.cmpi ne, %60, %c0_i32_38 : i32
    scf.if %61 {
      %c0_39 = arith.constant 0 : index
      %c0_40 = arith.constant 0 : index
      %62 = vector.load %arg11[%c0_39, %c0_40] : memref<8x32xf32, #tpu.memory_space<vmem>>, vector<8x32xf32>
      %c0_41 = arith.constant 0 : index
      %c0_42 = arith.constant 0 : index
      %63 = vector.load %arg10[%c0_41, %c0_42] : memref<8x1xf32, #tpu.memory_space<vmem>>, vector<8x1xf32>
      %64 = tpu.reciprocal %63 : vector<8x1xf32> -> vector<8x1xf32>
      %65 = vector.broadcast %64 : vector<8x1xf32> to vector<8x32xf32>
      %66 = arith.mulf %62, %65 : vector<8x32xf32>
      %c0_43 = arith.constant 0 : index
      %c0_44 = arith.constant 0 : index
      %c0_45 = arith.constant 0 : index
      %c0_46 = arith.constant 0 : index
      %67 = vector.load %arg8[%c0_43, %c0_44, %c0_45, %c0_46] : memref<1x1x8x32xf32, #tpu.memory_space<vmem>>, vector<1x1x8x32xf32>
      %68 = vector.shape_cast %67 : vector<1x1x8x32xf32> to vector<8x32xf32>
      %69 = vector.shape_cast %66 : vector<8x32xf32> to vector<1x1x8x32xf32>
      tpu.vector_store %arg8[%c0_43, %c0_44, %c0_45, %c0_46], %69 {strides = array<i32>} : memref<1x1x8x32xf32, #tpu.memory_space<vmem>>, vector<1x1x8x32xf32>,
    } else {
    }
    return
  }
  func.func @transform_0(%arg0: i32, %arg1: i32, %arg2: i32, %arg3: i32) -> (i32, i32, i32, i32) {
    %c0_i32 = arith.constant 0 : i32
    %c0_i32_0 = arith.constant 0 : i32
    return %arg0, %arg1, %arg2, %c0_i32 : i32, i32, i32, i32
  }
  func.func @transform_1(%arg0: i32, %arg1: i32, %arg2: i32, %arg3: i32) -> (i32, i32, i32, i32) {
    %c0_i32 = arith.constant 0 : i32
    %c0_i32_0 = arith.constant 0 : i32
    return %arg0, %arg1, %arg3, %c0_i32 : i32, i32, i32, i32
  }
  func.func @transform_2(%arg0: i32, %arg1: i32, %arg2: i32, %arg3: i32) -> (i32, i32, i32, i32) {
    %c0_i32 = arith.constant 0 : i32
    %c0_i32_0 = arith.constant 0 : i32
    return %arg0, %arg1, %arg3, %c0_i32 : i32, i32, i32, i32
  }
  func.func @transform_3(%arg0: i32, %arg1: i32, %arg2: i32, %arg3: i32) -> (i32, i32, i32, i32) {
    %c0_i32 = arith.constant 0 : i32
    %c0_i32_0 = arith.constant 0 : i32
    %c0_i32_1 = arith.constant 0 : i32
    return %arg0, %c0_i32, %c0_i32_0, %arg3 : i32, i32, i32, i32
  }
  func.func @transform_4(%arg0: i32, %arg1: i32, %arg2: i32, %arg3: i32) -> (i32, i32, i32, i32) {
    %c0_i32 = arith.constant 0 : i32
    %c0_i32_0 = arith.constant 0 : i32
    return %arg0, %arg1, %arg2, %c0_i32 : i32, i32, i32, i32
  }
}

</mosaic_0001>

<bundles_post_ra>
// kernel: tpu_custom_call.1
= control target key start
LH: loop header
LB: loop body
LE: loop exit
PB: predicated region body
PF: predicated region fallthrough
CT: control target
= control target key end

     0   :  { %s1636_s0 = inlined_call_operand.hbm [shape: f32[2,2,8,16], index: 0, kind: input, shape index: {}]   ;;  %s1637_s1 = inlined_call_operand.hbm [shape: f32[2,2,8,16], index: 1, kind: input, shape index: {}]   ;;  %s1638_s2 = inlined_call_operand.hbm [shape: f32[2,2,8,32], index: 2, kind: input, shape index: {}]   ;;  %s1639_s3 = inlined_call_operand.hbm [shape: s32[2,1,1,8], index: 3, kind: input, shape index: {}]   ;;  %s1640_s4 = inlined_call_operand.hbm [shape: f32[2,2,8,32], index: 4, kind: output, shape index: {}]  }
   0x1   :  { %1658 = sst [smem:[#allocation27_spill]] %s1637_s1 }
   0x2   :  { %1659 = sst [smem:[#allocation28_spill]] %s1640_s4 }
   0x3   :  { %9 = vsyncpa [#allocation6], 0 }
   0x4   :  { %11 = vsyncpa [#allocation6 + $0x1], 0 }
   0x5   :  { %12 = vsyncpa [#allocation9], 0 }
   0x6   :  { %14 = vsyncpa [#allocation9 + $0x1], 0 }
   0x7   :  { %15 = vsyncpa [#allocation12], 0 }
   0x8   :  { %17 = vsyncpa [#allocation12 + $0x1], 0 }
   0x9   :  { %18 = vsyncpa [#allocation7], 0 }
   0xa   :  { %20 = vsyncpa [#allocation7 + $0x1], 0  ;;  %s1249_s15 = smov 0   ;;  %s1251_s16 = smov 0  }
   0xb   :  { %s1253_s17 = smov 0   ;;  %s1255_s18 = smov 0  }
   0xc   :  { %s1257_s19 = smov 0   ;;  %s1259_s20 = smov 0  }
   0xd   :  { %s1261_s21 = smov 0   ;;  %s1263_s22 = smov 0  }
   0xe   :  { %s1265_s23 = smov 0   ;;  %s1267_s24 = smov 0  }
   0xf   :  { %s1269_s25 = smov 0  }
  0x10 LB: > { %1660 = sst [smem:[#allocation18_spill]] %s1185_s18  ;;  %s1305_s26 = sadd.s32 4294967295, %s1213_s25   ;;  %s1213_s25 = sphi %s1269_s25, %s26_s25   ;;  %s1209_s24 = sphi %s1267_s24, %s1708_s24   ;;  %s1205_s23 = sphi %s1265_s23, %s1700_s23   ;;  %s1201_s22 = sphi %s1263_s22, %s1707_s22   ;;  %s1197_s21 = sphi %s1261_s21, %s1699_s21   ;;  %s1193_s20 = sphi %s1259_s20, %s1698_s20   ;;  %s1189_s19 = sphi %s1257_s19, %s1706_s19   ;;  %s1185_s18 = sphi %s1255_s18, %s1705_s18   ;;  %s1181_s17 = sphi %s1253_s17, %s1704_s17   ;;  %s1177_s16 = sphi %s1251_s16, %s1703_s16   ;;  %s1173_s15 = sphi %s1249_s15, %s1702_s15  }
  0x11   : > { %1661 = sst [smem:[#allocation19_spill]] %s1193_s20  ;;  %s792_s27 = sadd.s32 4294967294, %s1213_s25  }
  0x12   : > { %1662 = sst [smem:[#allocation20_spill]] %s1197_s21  ;;  %s48_s28 = sadd.s32 1, %s1205_s23 }
  0x13   : > { %1663 = sst [smem:[#allocation21_spill]] %s1205_s23  ;;  %s52_s29 = sadd.s32 1, %s1209_s24 }
  0x14   : > { %p50_p0 = scmp.ge.s32.totalorder %s48_s28, 2  ;;  %s63_s30 = sadd.s32 1, %s1193_s20 }
  0x15   : > { %p70_p1 = scmp.ne.s32.totalorder %s1193_s20, %s1189_s19  ;;  %p1650_p2 = scmp.eq.s32.totalorder %s1213_s25, 0 }
  0x16   : > { %s1710_s28 = smov (%p50_p0, %s48_s28), 0  ;;  %s1712_s29 = smov (!%p50_p0, %s52_s29), %s1209_s24 }
  0x17   : > { %1664 = sst [smem:[#allocation22_spill]] %s1710_s28  ;;  %s57_s5 = ssub.s32 %s1205_s23, %s1710_s28 }
  0x18   : > { %p1321_p3 = por %p1650_p2, %p70_p1  ;;  %p54_p4 = scmp.ge.s32.totalorder %s1712_s29, 2 }
  0x19   : > { %p76_p5 = scmp.ne.s32.totalorder %s1189_s19, %s1185_s18  ;;  %p1649_p6 = scmp.eq.s32.totalorder %s1305_s26, 0 }
  0x1a   : > { %p192_p7 = scmp.eq.s32.totalorder %s1305_s26, 3  ;;  %s1714_s29 = smov (%p54_p4, %s1712_s29), 0 }
  0x1b   : > { %1666 = sst [smem:[#allocation23_spill]] %s1714_s29  ;;  %p1333_p8 = por %p1649_p6, %p76_p5 }
  0x1c   : > { %p1337_p9 = por %p192_p7, %p70_p1  ;;  %s1343_s9 = ssub.s32 %s1209_s24, %s1714_s29 }
  0x1d   : > { %s1667_s7 = scalar_select %p1333_p8, 1, 0 }
  0x1e   : > { %s1668_s8 = scalar_select %p1337_p9, 1, 0 }
  0x1f   : > { %p198_p10 = scmp.eq.s32.totalorder %s792_s27, 3  ;;  %s58_s10 = sor.u32 %s57_s5, %s1343_s9 }
  0x20   : > { %1669 = sst [smem:[#allocation24_spill]] %s1668_s8  ;;  %p61_p12 = scmp.eq.s32.totalorder %s58_s10, 0 }
  0x21   : > { %p1347_p13 = por %p198_p10, %p76_p5  ;;  %p1648_p0 = scmp.lt.s32.totalorder %s1213_s25, 4 }
  0x22   : > { %s1353_s12 = scalar_select %p61_p12, %s1193_s20, %s63_s30  }
  0x23   : > { %s1670_s11 = scalar_select %p1347_p13, 1, 0 }
  0x24   : > { %1672 = sst [smem:[#allocation26_spill]] %s1353_s12  ;;  %s1644_s13 = sand.u32 1, %s1193_s20  }
  0x25   : > { %1671 = sst [smem:[#allocation25_spill]] %s1670_s11  ;;  %s796_s14 = sshll.u32 %s1209_s24, 1 }
  0x26   : > { %s1359_s28 = sshll.u32 %s1644_s13, 3  ;;  %s228_s29 = sadd.s32 %s1205_s23, %s796_s14 }
  0x27   : > { %s1362_s18 = sshll.u32 %s228_s29, 7  ;;  %p1368_p1 = pnand %p1648_p0, %p1321_p3 }
  0x28   : > { %s239_s5 = sand.u32 1, %s1213_s25   ;;  %s1674_s1 = sld [smem:[#allocation27_spill]] }
  0x29   : > { %s1673_s27 = scalar_select %p1368_p1, 1, 0 }
  0x2a   : > { %s243_s29 = scalar_lea.vmem [#allocation8], %s1359_s28  ;;  %s1383_s6 = scalar_lea.sflag [#allocation9], %s239_s5 }
  0x2b   : > { %s253_s14 = sshll.u32 %s243_s29, 4  ;;  %p1389_p5 = pneg %p1368_p1  ;;  %s1380_s14 = int_to_ptr.vmem [resolvable:$true] %s253_s14 }
  0x2e   : > { %s1377_s12 = scalar_lea.hbm %s1674_s1, %s1362_s18  ;;  %s968_s29 = scalar_lea.hbm %s1674_s1, 512 }
  0x2f   : > { %s963_s13 = scalar_lea.hbm %s1377_s12, 128  ;;  %p969_p12 = scmp.lt.u32.totalorder %s1377_s12, %s1674_s1 }
  0x30   : > { %p964_p3 = scmp.ne.s32.totalorder %s1377_s12, %s963_s13  ;;  %p970_p0 = scmp.lt.u32.totalorder %s968_s29, %s963_s13 }
  0x31   : > { %p972_p2 = scmp.lt.u32.totalorder %s963_s13, %s1377_s12 }
  0x32   : > { %p966_p7 = pnand %p1389_p5, %p964_p3  ;;  %p971_p6 = por %p970_p0, %p969_p12 }
  0x34   : > { %p967_p10 = pneg %p966_p7  ;;  %p973_p11 = por %p972_p2, %p971_p6 }
  0x36   : > { %p974_p4 = pnand %p973_p11, %p967_p10 }
  0x38   : > { %977 = shalt.err (!%p974_p4)
}
  0x39   : > { %s978_s5 = scalar_lea.vmem %s1380_s14, 128  ;;  %s1215_s30 = smov [#allocation8]  }
  0x3a   : > { %p979_p3 = scmp.ne.s32.totalorder %s1380_s14, %s978_s5  ;;  %s983_s10 = sshll.u32 %s1215_s30, 4  ;;  %s984_s10 = int_to_ptr.vmem [resolvable:$false] %s983_s10 }
  0x3b   : > { %s985_s4 = scalar_lea.vmem %s984_s10, 256  ;;  %p986_p9 = scmp.lt.s32.totalorder %s1380_s14, %s984_s10 }
  0x3c   : > { %p981_p7 = pnand %p979_p3, %p1389_p5  ;;  %p987_p8 = scmp.lt.s32.totalorder %s985_s4, %s978_s5 }
  0x3e   : > { %p982_p13 = pneg %p981_p7  ;;  %p988_p0 = por %p987_p8, %p986_p9 }
  0x40   : > { %p989_p12 = pnand %p988_p0, %p982_p13 }
  0x42   : > { %992 = shalt.err (!%p989_p12)
}
  0x43   : > { %848 = dma.hbm_to_vmem [thread:$0]  (!%p1368_p1), %s1377_s12, 128, %s1380_s14, %s1383_s6  }
  0x44   : > { %p297_p2 = scmp.lt.s32.totalorder %s1213_s25, 5  ;;  %p1676_p6 = scmp.ge.s32.totalorder %s1213_s25, 1 }
  0x45   : > { %s1424_s5 = scalar_lea.hbm %s1636_s0, %s1362_s18  ;;  %s222_s30 = scalar_lea.vmem [#allocation5], %s1359_s28 }
  0x46   : > { %p1416_p11 = pnand %p1676_p6, %p297_p2  ;;  %s232_s10 = sshll.u32 %s222_s30, 4  ;;  %s233_s10 = int_to_ptr.vmem [resolvable:$true] %s232_s10 }
  0x47   : > { %s1678_s4 = sand.u32 1, %s1193_s20   ;;  %s993_s14 = scalar_lea.hbm %s1424_s5, 128 }
  0x48   : > { %s1677_s11 = scalar_select %p1416_p11, 1, 0 }
  0x49   : > { %s219_s12 = scalar_lea.sflag [#allocation6], %s1678_s4  ;;  %p994_p8 = scmp.ne.s32.totalorder %s1424_s5, %s993_s14 }
  0x4a   : > { %s998_s13 = scalar_lea.hbm %s1636_s0, 512  ;;  %p999_p4 = scmp.lt.u32.totalorder %s1424_s5, %s1636_s0 }
  0x4b   : > { %p996_p9 = pnand %p994_p8, %p1389_p5  ;;  %p1000_p10 = scmp.lt.u32.totalorder %s998_s13, %s993_s14 }
  0x4c   : > { %p1002_p7 = scmp.lt.u32.totalorder %s993_s14, %s1424_s5 }
  0x4d   : > { %p997_p13 = pneg %p996_p9  ;;  %p1001_p3 = por %p1000_p10, %p999_p4 }
  0x4f   : > { %p1003_p0 = por %p1002_p7, %p1001_p3 }
  0x51   : > { %p1004_p12 = pnand %p1003_p0, %p997_p13 }
  0x53   : > { %1007 = shalt.err (!%p1004_p12)
}
  0x54   : > { %s1008_s30 = scalar_lea.vmem %s233_s10, 128  ;;  %s1216_s4 = smov [#allocation5]  }
  0x55   : > { %p1009_p2 = scmp.ne.s32.totalorder %s233_s10, %s1008_s30  ;;  %s1013_s20 = sshll.u32 %s1216_s4, 4  ;;  %s1014_s20 = int_to_ptr.vmem [resolvable:$false] %s1013_s20 }
  0x56   : > { %s1015_s1 = scalar_lea.vmem %s1014_s20, 256  ;;  %p1016_p9 = scmp.lt.s32.totalorder %s233_s10, %s1014_s20 }
  0x57   : > { %p1011_p6 = pnand %p1009_p2, %p1389_p5  ;;  %p1017_p11 = scmp.lt.s32.totalorder %s1015_s1, %s1008_s30 }
  0x59   : > { %p1012_p8 = pneg %p1011_p6  ;;  %p1018_p1 = por %p1017_p11, %p1016_p9 }
  0x5b   : > { %p1019_p4 = pnand %p1018_p1, %p1012_p8 }
  0x5d   : > { %1022 = shalt.err (!%p1019_p4)
}
  0x5e   : > { %p1679_p10 = scmp.ne.s32.totalorder %s1673_s27, 0  ;;  %s1450_s14 = scalar_lea.hbm %s1638_s2, %s1362_s18 }
  0x5f   : > { %s264_s20 = scalar_lea.vmem [#allocation10], %s1359_s28  ;;  %s1023_s29 = scalar_lea.hbm %s1450_s14, 128 }
  0x60   : > { %845 = dma.hbm_to_vmem [thread:$0]  (!%p1679_p10), %s1424_s5, 128, %s233_s10, %s219_s12  }
  0x61   : > { %s274_s13 = sshll.u32 %s264_s20, 4  ;;  %p1024_p1 = scmp.ne.s32.totalorder %s1450_s14, %s1023_s29  ;;  %s275_s13 = int_to_ptr.vmem [resolvable:$true] %s274_s13 }
  0x62   : > { %s1028_s5 = scalar_lea.hbm %s1638_s2, 512  ;;  %p1029_p3 = scmp.lt.u32.totalorder %s1450_s14, %s1638_s2 }
  0x63   : > { %p1026_p11 = pnand %p1024_p1, %p1389_p5  ;;  %p1030_p7 = scmp.lt.u32.totalorder %s1028_s5, %s1023_s29 }
  0x64   : > { %p1032_p12 = scmp.lt.u32.totalorder %s1023_s29, %s1450_s14 }
  0x65   : > { %p1027_p13 = pneg %p1026_p11  ;;  %p1031_p0 = por %p1030_p7, %p1029_p3 }
  0x67   : > { %p1033_p2 = por %p1032_p12, %p1031_p0 }
  0x69   : > { %p1034_p6 = pnand %p1033_p2, %p1027_p13 }
  0x6b   : > { %1037 = shalt.err (!%p1034_p6)
}
  0x6c   : > { %s1038_s18 = scalar_lea.vmem %s275_s13, 128  ;;  %s1217_s28 = smov [#allocation10]  }
  0x6d   : > { %p1039_p8 = scmp.ne.s32.totalorder %s275_s13, %s1038_s18  ;;  %s1043_s1 = sshll.u32 %s1217_s28, 4  ;;  %s1044_s1 = int_to_ptr.vmem [resolvable:$false] %s1043_s1 }
  0x6e   : > { %s1045_s21 = scalar_lea.vmem %s1044_s1, 256  ;;  %p1046_p1 = scmp.lt.s32.totalorder %s275_s13, %s1044_s1 }
  0x6f   : > { %p1041_p9 = pnand %p1039_p8, %p1389_p5  ;;  %p1047_p11 = scmp.lt.s32.totalorder %s1045_s21, %s1038_s18 }
  0x71   : > { %p1042_p4 = pneg %p1041_p9  ;;  %p1048_p10 = por %p1047_p11, %p1046_p1 }
  0x73   : > { %p1049_p3 = pnand %p1048_p10, %p1042_p4 }
  0x75   : > { %1052 = shalt.err (!%p1049_p3)
}
  0x76   : > { %p1680_p7 = scmp.ne.s32.totalorder %s1673_s27, 0  ;;  %s151_s23 = sadd.s32 1, %s1181_s17 }
  0x77   : > { %p1681_p5 = scmp.eq.s32.totalorder %s1343_s9, 0  ;;  %p158_p10 = scmp.ne.s32.totalorder %s1181_s17, %s1177_s16 }
  0x78   : > { %851 = dma.hbm_to_vmem [thread:$0]  (!%p1680_p7), %s1450_s14, 128, %s275_s13, %s1383_s6  }
  0x79   : > { %s1475_s8 = scalar_select %p1681_p5, %s1181_s17, %s151_s23  }
  0x7a   : > { %p164_p13 = scmp.ne.s32.totalorder %s1177_s16, %s1173_s15  ;;  %s281_s27 = sand.u32 1, %s1181_s17  }
  0x7b   : > { %s804_s20 = sshll.u32 %s1209_s24, 4  ;;  %p1682_p0 = scmp.eq.s32.totalorder %s1213_s25, 0 }
  0x7c   : > { %p1683_p2 = scmp.eq.s32.totalorder %s1305_s26, 0  ;;  %s1494_s5 = scalar_lea.hbm %s1639_s3, %s804_s20 }
  0x7d   : > { %p160_p12 = por %p158_p10, %p1682_p0  ;;  %s284_s9 = scalar_lea.vmem [#allocation11], %s281_s27 }
  0x7e   : > { %p1487_p6 = por %p164_p13, %p1683_p2  ;;  %s292_s15 = sshll.u32 %s284_s9, 4  ;;  %s1496_s15 = int_to_ptr.vmem [resolvable:$true] %s292_s15 }
  0x7f   : > { %p1685_p8 = scmp.lt.s32.totalorder %s1213_s25, 4  ;;  %s282_s14 = scalar_lea.sflag [#allocation12], %s281_s27 }
  0x80   : > { %s1053_s13 = scalar_lea.hbm %s1494_s5, 16  ;;  %s1058_s18 = scalar_lea.hbm %s1639_s3, 32 }
  0x81   : > { %p1500_p9 = pnand %p1685_p8, %p160_p12  ;;  %p1054_p4 = scmp.ne.s32.totalorder %s1494_s5, %s1053_s13 }
  0x82   : > { %p1059_p7 = scmp.lt.u32.totalorder %s1494_s5, %s1639_s3  ;;  %p1060_p5 = scmp.lt.u32.totalorder %s1058_s18, %s1053_s13 }
  0x83   : > { %p1055_p1 = pneg %p1500_p9  ;;  %p1062_p13 = scmp.lt.u32.totalorder %s1053_s13, %s1494_s5 }
  0x84   : > { %p1061_p10 = por %p1060_p5, %p1059_p7 }
  0x85   : > { %p1056_p11 = pnand %p1055_p1, %p1054_p4 }
  0x86   : > { %p1063_p0 = por %p1062_p13, %p1061_p10 }
  0x87   : > { %p1057_p3 = pneg %p1056_p11 }
  0x89   : > { %p1064_p12 = pnand %p1063_p0, %p1057_p3 }
  0x8b   : > { %1067 = shalt.err (!%p1064_p12)
}
  0x8c   : > { %s1068_s21 = scalar_lea.vmem %s1496_s15, 16  ;;  %s1218_s23 = smov [#allocation11]  }
  0x8d   : > { %p1069_p2 = scmp.ne.s32.totalorder %s1496_s15, %s1068_s21  ;;  %s1073_s27 = sshll.u32 %s1218_s23, 4  ;;  %s1074_s27 = int_to_ptr.vmem [resolvable:$false] %s1073_s27 }
  0x8e   : > { %s1075_s20 = scalar_lea.vmem %s1074_s27, 32  ;;  %p1076_p11 = scmp.lt.s32.totalorder %s1496_s15, %s1074_s27 }
  0x8f   : > { %p1071_p8 = pnand %p1069_p2, %p1055_p1  ;;  %p1077_p7 = scmp.lt.s32.totalorder %s1075_s20, %s1068_s21 }
  0x91   : > { %p1072_p4 = pneg %p1071_p8  ;;  %p1078_p5 = por %p1077_p7, %p1076_p11 }
  0x93   : > { %p1079_p10 = pnand %p1078_p5, %p1072_p4 }
  0x95   : > { %1082 = shalt.err (!%p1079_p10)
}
  0x96   : > { %854 = dma.hbm_to_vmem [thread:$0]  (!%p1500_p9), %s1494_s5, 16, %s1496_s15, %s282_s14  }
  0x97   : > { %p1687_p3 = scmp.ne.s32.totalorder %s1677_s11, 0 }
  0x98   : > { %s1532_s30 = sand.u32 (!%p1687_p3), 1, %s1189_s19   ;;  %p1688_p1 = scmp.ne.s32.totalorder (!%p1687_p3), %s1667_s7, 0 }
  0x99   : > { %301 = sbr.rel (%p1687_p3) target bundleno = 982 (0x3d6), region = 36  ;;  %s1535_s4 = sshll.u32 (!%p1687_p3), %s1532_s30, 3 }
  0x9a   : > { %s304_s9 = scalar_lea.sflag (!%p1687_p3), [#allocation6], %s1532_s30  ;;  %s307_s13 = scalar_lea.vmem (!%p1687_p3), [#allocation5], %s1535_s4 }
  0xa0   : > { %1156 = dma.done.wait (%p1688_p1), %s304_s9, 128  }
  0xa1   : > { %1158 = vsyncadd (%p1688_p1), %s304_s9, 4294967168  ;;  %s312_s11 = sand.u32 1, %s1305_s26   ;;  %s316_s15 = scalar_lea.vmem [#allocation8], %s1535_s4 }
  0xa2   : > { %s313_s5 = scalar_lea.sflag [#allocation9], %s312_s11 }
  0xa3   : > { %1160 = dma.done.wait (%p1688_p1), %s313_s5, 256  }
  0xa4   : > { %1162 = vsyncadd (%p1688_p1), %s313_s5, 4294967040  ;;  %s330_s6 = sand.u32 1, %s1177_s16   ;;  %s325_s14 = scalar_lea.vmem [#allocation10], %s1535_s4 }
  0xa5   : > { %s331_s10 = scalar_lea.sflag [#allocation12], %s330_s6  ;;  %s333_s12 = scalar_lea.vmem [#allocation11], %s330_s6 }
  0xa6   : > { %1164 = dma.done.wait (%p1487_p6), %s331_s10, 16  }
  0xa7   : > { %1166 = vsyncadd (%p1487_p6), %s331_s10, 4294967280  ;;  %v1219_v0 = vmov 0.0   ;;  %vm1220_vm0 = vmmov 0   ;;  %vm385_vm1 = vcmask 130048   ;;  %v383_v1 = vld [vmem:[%s316_s15] sm:$0xff]  ;;  %v381_v2 = vld [vmem:[%s307_s13] sm:$0xff]  ;;  %v465_v4 = vlaneseq }
  0xa8   : > { %822 = vmatprep.subr.mxu0 %v1219_v0  ;;  %824 = vmatprep.mubr.msk.f32.mxu0 %vm1220_vm0, %v1219_v0  ;;  %v382_v3 = vmul.f32 0.25, %v381_v2  ;;  %v1221_v5 = vmov 0   ;;  %vm376_vm2 = vcmask 7168   ;;  %v1222_v9 = vmov -inf   ;;  %v462_v10 = vld [vmem:[%s333_s12] sm:$0x1] }
  0xa9   : > { %827 = vmatprep.subr.mxu1 %v1219_v0  ;;  %829 = vmatprep.mubr.msk.f32.mxu1 %vm1220_vm0, %v1219_v0  ;;  %v466_v6 = vshrl.u32 %v465_v4, 7  ;;  %v502_v7 = vand.u32 127, %v465_v4  ;;  %377 = vst.msk [vmem:[#allocation2] sm:$0xff] %vm376_vm2, %v1222_v9  ;;  %378 = vst.msk [vmem:[#allocation3] sm:$0xff] %vm376_vm2, %v1219_v0  ;;  %vm463_vm3 = vcmp.ne.s32.totalorder %v462_v10, 0  ;;  %vm472_vm5 = vcmask 64512  }
  0xaa   : > { %823 = vmatpush3.xpose.msk.msra.mxu0 %vm385_vm1, %v383_v1  ;;  %953 = vset.pattern.permute.xlu0 %v1221_v5  ;;  %v464_v12 = vsel %vm463_vm3, 1, %v1221_v5  ;;  %v384_v22 = vld [vmem:[%s325_s14] sm:$0xff]  ;;  %vm379_vm6 = vcmask 261120   ;;  %s1689_s26 = sld [smem:[#allocation20_spill]]  ;;  %s1690_s7 = sld [smem:[#allocation24_spill]] }
  0xab   : > { %954 = vset.pattern.permute.xlu1 %v1221_v5  ;;  %v506_v8 = vsub.s32 %v466_v6, %v502_v7  ;;  %v467_v11 = vsub.s32 0, %v466_v6  ;;  %828 = vmatpush3.msra.mxu1 %v384_v22  ;;  %380 = vst.msk [vmem:[#allocation4] sm:$0xff] %vm379_vm6, %v1219_v0  ;;  %s814_s29 = sshll.u32 %s1201_s22, 1  ;;  %s371_s1 = scalar_lea.vmem [#allocation13], %s1535_s4 }
  0xac   : > { %s628_s21 = sshll.u32 %s371_s1, 4  ;;  %s1691_s20 = sld [smem:[#allocation28_spill]]  ;;  %s1574_s21 = int_to_ptr.vmem [resolvable:$true] %s628_s21 }
  0xad   : > { %825 = vmatmul.mubr.msk.f32.vlgmr.msra.gmra.mrb[0].mxu0 %vm385_vm1, %v382_v3  ;;  %v468_v13 = vrot.slane %v464_v12, %v467_v11  ;;  %v507_v23 = vcvt.s32.f32 %v506_v8  ;;  %s612_s22 = scalar_lea.sflag [#allocation7], %s1532_s30  ;;  %s1083_s11 = scalar_lea.vmem %s1574_s21, 128 }
  0xae   : > { %p1084_p6 = scmp.ne.s32.totalorder %s1574_s21, %s1083_s11  ;;  %s1223_s4 = smov [#allocation13]  }
  0xaf   : > { %vm469_vm4 = vcmp.eq.s32.totalorder %v468_v13, 1  ;;  %v508_v24 = vmul.f32 %v507_v23, %v507_v23  ;;  %s1087_s5 = sshll.u32 %s1223_s4, 4  ;;  %s1088_s5 = int_to_ptr.vmem [resolvable:$false] %s1087_s5 }
  0xb0   : > { %v471_v18 = vld [vmem:[#allocation2] sm:$0xff]  ;;  %v488_v37 = vld [vmem:[#allocation3] sm:$0xff]  ;;  %s624_s18 = sadd.s32 %s1689_s26, %s814_s29  ;;  %p1693_p9 = scmp.ne.s32.totalorder %s1690_s7, 0 }
  0xb1   : > { %v509_v25 = vsub.f32 0.0, %v508_v24  ;;  %s815_s28 = sshll.u32 %s624_s18, 7  ;;  %s1089_s15 = scalar_lea.vmem %s1088_s5, 256 }
  0xb2   : > { %v514_v43 = vld [vmem:[#allocation4] sm:$0xff]  ;;  %s1692_s9 = smov %s1691_s20  ;;  %s1572_s13 = scalar_lea.hbm %s1691_s20, %s815_s28 }
  0xb3   : > { %v510_v26 = vmul.f32 0.03125, %v509_v25  ;;  %p1085_p13 = pnand %p1084_p6, %p1693_p9  ;;  %p1090_p12 = scmp.lt.s32.totalorder %s1574_s21, %s1088_s5 }
  0xb4   : > { %p1091_p2 = scmp.lt.s32.totalorder %s1089_s15, %s1083_s11 }
  0xb5   : > { %v511_v27 = vmul.f32 1.442695, %v510_v26  ;;  %p1086_p0 = pneg %p1085_p13 }
  0xb6   : > { %p1092_p8 = por %p1091_p2, %p1090_p12 }
  0xb7   : > { %955 = vpow2.f32 %v511_v27 }
  0xb8   : > { %p1093_p4 = pnand %p1092_p8, %p1086_p0 }
  0xc1   : > { %v956_v31 = vpop.eup %955 }
 0x180   : > { %v458_v14 = vpop.f32.mrb[0].mxu0 }
 0x181   : > { %v470_v15 = vsel %vm469_vm4, -1e+09, %v458_v14  ;;  %v826_v16 = vpop.f32.mrb[1].mxu0 }
 0x182   : > { %v473_v17 = vsel %vm472_vm5, %v470_v15, -inf }
 0x183   : > { %474 = vmax.xlane.f32.xlu0 %v473_v17 }
 0x210   : > { %v475_v19 = vpop.xlane.xlu0 %474 }
 0x211   : > { %v476_v20 = vmax.f32 %v471_v18, %v475_v19 }
 0x213   : > { %v477_v21 = vsub.f32 %v471_v18, %v476_v20  ;;  %597 = vst.msk [vmem:[#allocation2] sm:$0xff] %vm376_vm2, %v476_v20  ;;  %482 = vperm.xlu0 %953, %v476_v20  }
 0x215   : > { %v478_v35 = vmul.f32 1.442695, %v477_v21 }
 0x292   : > { %v483_v28 = vpop.permute.xlu0 %482 }
 0x293   : > { %v485_v29 = vsub.f32 %v470_v15, %v483_v28 }
 0x295   : > { %v486_v30 = vmul.f32 1.442695, %v485_v29 }
 0x297   : > { %957 = vpow2.f32 %v486_v30 }
 0x298   : > { %959 = vpow2.f32 %v478_v35 }
 0x2a1   : > { %v958_v32 = vpop.eup %957 }
 0x2a2   : > { %v490_v33 = vsel %vm472_vm5, %v958_v32, 0.0  ;;  %v513_v34 = vmul.f32 %v958_v32, %v956_v31  ;;  %v960_v36 = vpop.eup %959 }
 0x2a3   : > { %491 = vadd.xlane.f32.xlu1 %v490_v33  ;;  %v489_v38 = vmul.f32 %v960_v36, %v488_v37 }
 0x2a4   : > { %830 = vmatmul.mubr.msk.f32.vlgmr.msra.gmra.mrb[0].mxu1 %vm472_vm5, %v513_v34 }
 0x2b4   : > { %517 = vperm.xlu1 %954, %v960_v36  }
 0x330   : > { %v492_v39 = vpop.xlane.xlu1 %491 }
 0x331   : > { %v493_v40 = vadd.f32 %v492_v39, %v489_v38 }
 0x333   : > { %495 = vst.msk [vmem:[#allocation3] sm:$0xff] %vm376_vm2, %v493_v40 }
 0x334   : > { %v518_v44 = vpop.permute.xlu1 %517 }
 0x335   : > { %v520_v45 = vmul.f32 %v518_v44, %v514_v43 }
 0x33a   : > { %v602_v41 = vld [vmem:[#allocation3] sm:$0xff] }
 0x33b   : > { %961 = vrcp.f32 %v602_v41 }
 0x345   : > { %v962_v42 = vpop.eup %961 }
 0x346   : > { %606 = vperm.xlu1 %954, %v962_v42  }
 0x377   : > { %v590_v46 = vpop.f32.mrb[0].mxu1 }
 0x378   : > { %v594_v47 = vadd.f32 %v590_v46, %v520_v45  ;;  %v831_v48 = vpop.f32.mrb[1].mxu1 }
 0x37a   : > { %596 = vst.msk [vmem:[#allocation4] sm:$0xff] %vm379_vm6, %v594_v47 }
 0x381   : > { %v601_v49 = vld [vmem:[#allocation4] sm:$0xff] }
 0x3c5   : > { %v607_v50 = vpop.permute.xlu1 %606 }
 0x3c6   : > { %v609_v51 = vmul.f32 %v607_v50, %v601_v49 }
 0x3c8   : > { %610 = vst.msk [vmem:[%s371_s1] sm:$0xff] %vm379_vm6, %v609_v51 }
 0x3c9   : > { %1096 = shalt.err (!%p1093_p4)
}
 0x3ca   : > { %s1097_s30 = scalar_lea.hbm %s1572_s13, 128  ;;  %s1101_s10 = scalar_lea.hbm %s1692_s9, 512 }
 0x3cb   : > { %p1098_p11 = scmp.ne.s32.totalorder %s1572_s13, %s1097_s30  ;;  %p1102_p10 = scmp.lt.u32.totalorder %s1572_s13, %s1692_s9 }
 0x3cc   : > { %p1103_p3 = scmp.lt.u32.totalorder %s1101_s10, %s1097_s30  ;;  %p1105_p6 = scmp.lt.u32.totalorder %s1097_s30, %s1572_s13 }
 0x3cd   : > { %p1099_p7 = pnand %p1098_p11, %p1693_p9 }
 0x3ce   : > { %p1104_p1 = por %p1103_p3, %p1102_p10 }
 0x3cf   : > { %p1100_p5 = pneg %p1099_p7 }
 0x3d0   : > { %p1106_p13 = por %p1105_p6, %p1104_p1 }
 0x3d2   : > { %p1107_p0 = pnand %p1106_p13, %p1100_p5 }
 0x3d4   : > { %1110 = shalt.err (!%p1107_p0)
}
 0x3d5   : > { %840 = dma.vmem_to_hbm [thread:$0]  (%p1693_p9), %s1574_s21, 128, %s1572_s13, %s612_s22  }
 0x3d6 PF: > { %s1694_s29 = sld [smem:[#allocation18_spill]]  ;;  %s1695_s18 = sld [smem:[#allocation25_spill]] }
 0x3d7   : > { %p860_p12 = scmp.ge.s32.totalorder %s1213_s25, 2 }
 0x3dc   : > { %s640_s28 = sand.u32 1, %s1694_s29   ;;  %p1696_p2 = scmp.ne.s32.totalorder %s1695_s18, 0 }
 0x3dd   : > { %s641_s1 = scalar_lea.sflag [#allocation7], %s640_s28 }
 0x3de   : > { %p856_p8 = pnand %p860_p12, %p1696_p2 }
 0x3e0   : > { %1168 = dma.done.wait (!%p856_p8), %s641_s1, 128  }
 0x3e1   : > { %1170 = vsyncadd (!%p856_p8), %s641_s1, 4294967168  ;;  %s26_s25 = sadd.s32 1, %s1213_s25   ;;  %s1697_s7 = sld [smem:[#allocation19_spill]] }
 0x3e2   : > { %p23_p4 = scmp.ge.s32.totalorder %s26_s25, 6   ;;  %s1698_s20 = sld [smem:[#allocation26_spill]] }
 0x3e3   : > { %s1699_s21 = sld [smem:[#allocation21_spill]]  ;;  %s1700_s23 = sld [smem:[#allocation22_spill]] }
 0x3e4   : > { %s1701_s27 = sld [smem:[#allocation23_spill]]  ;;  %s1702_s15 = smov %s1177_s16 }
 0x3e5   : > { %s1703_s16 = smov %s1181_s17  ;;  %s1704_s17 = smov %s1475_s8 }
 0x3e6   : > { %s1705_s18 = smov %s1189_s19  ;;  %s1707_s22 = smov %s1209_s24 }
 0x3e7   : > { %s1706_s19 = smov %s1697_s7  ;;  %25 = sbr.rel (!%p23_p4) target bundleno = 16 (0x10), region = 126 }
 0x3ea   : > { %s1708_s24 = smov %s1701_s27 }
 0x3ee   :  { %646 = vsyncpa [#allocation6], 1 }
 0x3ef   :  { %648 = vsyncpa [#allocation6 + $0x1], 1 }
 0x3f0   :  { %649 = vsyncpa [#allocation9], 1 }
 0x3f1   :  { %651 = vsyncpa [#allocation9 + $0x1], 1 }
 0x3f2   :  { %652 = vsyncpa [#allocation12], 1 }
 0x3f3   :  { %654 = vsyncpa [#allocation12 + $0x1], 1 }
 0x3f4   :  { %655 = vsyncpa [#allocation7], 1 }
 0x3f5   :  { %657 = vsyncpa [#allocation7 + $0x1], 1 }

</bundles_post_ra>
